<compile_context>
chip_gen: v7x
topology: tpu7x:2x2x1
jax: 0.10.0
libtpu: 0.0.40
codegen_flags: <defaults>
</compile_context>

<pallas_src>
import functools

import jax
import jax.numpy as jnp
from jax.experimental import pallas as pl
from jax.experimental.pallas import tpu as pltpu

_LANES = 128
_SUB = 8


def _num_tensorcores():
    """Best-effort TensorCore count for this chip (1 on v5e/v6e, 2 on v7x)."""
    try:
        info = pltpu.get_tpu_info()
    except Exception:
        return 1
    for attr in ("num_cores", "num_tensorcores", "tensorcore_count",
                 "core_count", "cores_per_chip", "num_tensor_cores"):
        v = getattr(info, attr, None)
        if isinstance(v, int) and v >= 1:
            return v
    return 1


def _berhu_kernel(pred_ref, target_ref, out_ref, *, thr, thr_sq, inv_2thr,
                  sharded, blocks_per_shard, num_full_blocks, need_guard):
    if sharded:
        c = pl.program_id(0)   # shard (TensorCore on multi-TC chips)
        i = pl.program_id(1)   # block within shard (reduction axis)
    else:
        c = 0
        i = pl.program_id(0)

    @pl.when(i == 0)
    def _():
        out_ref[...] = jnp.zeros_like(out_ref)

    def _accumulate():
        p = pred_ref[...].astype(jnp.float32)
        t = target_ref[...].astype(jnp.float32)
        diff = jnp.abs(p - t)
        # BerHu: |d| if |d| <= c else (d^2 + c^2) / (2c)   (divide -> multiply)
        per_elem = jnp.where(diff <= thr, diff, (diff * diff + thr_sq) * inv_2thr)
        # VPU-only grouped accumulation into the resident (8,128) output block.
        out_ref[...] += jnp.sum(per_elem.reshape(-1, _SUB, _LANES), axis=0)

    if need_guard:
        # Only needed when the multi-core split is not exact (clamped duplicate
        # block must not contribute).
        @pl.when(c * blocks_per_shard + i < num_full_blocks)
        def _():
            _accumulate()
    else:
        _accumulate()


def berhu_loss(pred, target, threshold=0.2, *, block_rows=None):
    """BerHu loss: mean over all elements of the reverse-Huber transform."""
    assert pred.shape == target.shape, "pred/target shape mismatch"
    assert threshold > 0, "BerHu threshold must be > 0 (l2 branch divides by 2*thr)"
    thr = float(threshold)
    thr_sq = thr * thr
    inv_2thr = 1.0 / (2.0 * thr)

    def _elementwise(p, t):
        d = jnp.abs(p.astype(jnp.float32) - t.astype(jnp.float32))
        return jnp.where(d <= thr, d, (d * d + thr_sq) * inv_2thr)

    n = pred.size
    p_flat = pred.reshape(-1)
    t_flat = target.reshape(-1)

    rows_total = n // _LANES
    usable_rows = (rows_total // _SUB) * _SUB   # kernel rows must be (8,128)-aligned

    # dtype-aware block size: ~2 MiB per input block (4096 rows f32 / 8192 bf16)
    # -> at the measured DMA-roofline plateau on v5e/v6e/v7x.
    itemsize = pred.dtype.itemsize
    if block_rows is None:
        block_rows = max(_SUB,
                         ((2 * 1024 * 1024) // (_LANES * itemsize)) // _SUB * _SUB)
    tile_rows = min(block_rows, usable_rows)

    total = jnp.float32(0.0)
    n_kernel = 0

    if usable_rows >= _SUB:
        num_full_blocks = usable_rows // tile_rows
        kernel_rows = num_full_blocks * tile_rows
        n_kernel = kernel_rows * _LANES

        if n % _LANES == 0:
            # Pure zero-copy reshape; kernel grid covers only the full blocks.
            p2d = p_flat.reshape(rows_total, _LANES)
            t2d = t_flat.reshape(rows_total, _LANES)
        else:
            # TODO(synk): a fully copy-free path for non-128-aligned sizes would
            # need in-kernel masking over a manually DMA'd 1-D stream.
            p2d = p_flat[:rows_total * _LANES].reshape(rows_total, _LANES)
            t2d = t_flat[:rows_total * _LANES].reshape(rows_total, _LANES)

        # Only shard across TensorCores where it is real (v7x); otherwise keep a
        # simple 1-D reduction grid with no clamp/guard.
        num_cores = _num_tensorcores()
        num_shards = num_cores if (num_cores > 1 and num_full_blocks >= num_cores) else 1

        if num_shards == 1:
            kernel = functools.partial(
                _berhu_kernel, thr=thr, thr_sq=thr_sq, inv_2thr=inv_2thr,
                sharded=False, blocks_per_shard=num_full_blocks,
                num_full_blocks=num_full_blocks, need_guard=False)
            grid = (num_full_blocks,)
            in_map = lambda i: (i, 0)
            out_map = lambda i: (0, 0)
            semantics = ("arbitrary",)
        else:
            blocks_per_shard = pl.cdiv(num_full_blocks, num_shards)
            exact = (blocks_per_shard * num_shards == num_full_blocks)
            if exact:
                in_map = lambda c, i: (c * blocks_per_shard + i, 0)
            else:
                in_map = lambda c, i: (
                    jnp.minimum(c * blocks_per_shard + i, num_full_blocks - 1), 0)
            out_map = lambda c, i: (c, 0)
            kernel = functools.partial(
                _berhu_kernel, thr=thr, thr_sq=thr_sq, inv_2thr=inv_2thr,
                sharded=True, blocks_per_shard=blocks_per_shard,
                num_full_blocks=num_full_blocks, need_guard=not exact)
            grid = (num_shards, blocks_per_shard)
            semantics = (pltpu.CORE_PARALLEL, pltpu.ARBITRARY)

        cost = pl.CostEstimate(
            flops=6 * n_kernel,
            transcendentals=0,
            bytes_accessed=2 * n_kernel * itemsize + num_shards * _SUB * _LANES * 4,
        )

        partials = pl.pallas_call(
            kernel,
            out_shape=jax.ShapeDtypeStruct((num_shards * _SUB, _LANES), jnp.float32),
            grid_spec=pltpu.PrefetchScalarGridSpec(
                num_scalar_prefetch=0,
                grid=grid,
                in_specs=[
                    pl.BlockSpec((tile_rows, _LANES), in_map),
                    pl.BlockSpec((tile_rows, _LANES), in_map),
                ],
                out_specs=pl.BlockSpec((_SUB, _LANES), out_map),
            ),
            compiler_params=pltpu.CompilerParams(
                dimension_semantics=semantics,
                vmem_limit_bytes=32 * 1024 * 1024,
            ),
            cost_estimate=cost,
        )(p2d, t2d)
        total = total + jnp.sum(partials)

    # Tail (< one block of rows plus the ragged <128-element remainder): plain JAX.
    if n_kernel < n:
        total = total + jnp.sum(_elementwise(p_flat[n_kernel:], t_flat[n_kernel:]))

    return total / jnp.float32(n)


def _berhu_ref(pred, target, threshold=0.2):
    diff = jnp.abs(pred.astype(jnp.float32) - target.astype(jnp.float32))
    thr = jnp.float32(threshold)
    l2 = (diff * diff + thr * thr) / (2.0 * thr)
    return jnp.mean(jnp.where(diff <= thr, diff, l2))


if __name__ == "__main__":
    key = jax.random.PRNGKey(0)

    def _check(idx, shape, threshold=0.2, block_rows=None):
        k1, k2 = jax.random.split(jax.random.fold_in(key, idx))
        pred = jax.random.uniform(k1, shape, dtype=jnp.float32)
        target = jax.random.uniform(k2, shape, dtype=jnp.float32)
        loss = jax.block_until_ready(
            berhu_loss(pred, target, threshold, block_rows=block_rows))
        ref = _berhu_ref(pred, target, threshold)
        assert jnp.allclose(loss, ref, rtol=1e-4, atol=1e-6), (shape, loss, ref)

    # Primary small case: NCHW depth-style input (single block, zero-copy path).
    _check(0, (2, 4, 16, 16))
    # Tiny non-aligned count -> pure-JAX fallback path.
    _check(1, (3, 1, 13, 7))
    # Lane-aligned multi-block case (forced small blocks) -> exercises the
    # resident-accumulator reduction over several grid steps plus a JAX row tail.
    _check(2, (1, 1, 257, 128), block_rows=64)
    # Non-128-aligned count that still runs the kernel on the aligned prefix.
    _check(3, (2, 5, 13, 9))

    print("KERNEL_OK")
</pallas_src>

<mosaic_0001>
module attributes {stable_mosaic.version = 11 : i64} {
  func.func @_berhu_kernel(%arg0: i32, %arg1: memref<16x128xf32, #tpu.memory_space<vmem>>, %arg2: memref<16x128xf32, #tpu.memory_space<vmem>>, %arg3: memref<8x128xf32, #tpu.memory_space<vmem>>) attributes {dimension_semantics = [#tpu.dimension_semantics<arbitrary>], iteration_bounds = array<i64: 1>, scalar_prefetch = 0 : i64, scratch_operands = 0 : i64, tpu.core_type = #tpu.core_type<tc>, window_params = [{transform_indices = @transform_0, window_bounds = array<i64: 16, 128>}, {transform_indices = @transform_1, window_bounds = array<i64: 16, 128>}, {pipeline_mode = #tpu.pipeline_mode<synchronous>, transform_indices = @transform_2, window_bounds = array<i64: 8, 128>}]} {
    %c0_i32 = arith.constant 0 : i32
    %0 = arith.cmpi eq, %arg0, %c0_i32 : i32
    %1 = arith.extui %0 : i1 to i32
    %c0_i32_0 = arith.constant 0 : i32
    %2 = arith.cmpi ne, %1, %c0_i32_0 : i32
    scf.if %2 {
      %cst_11 = arith.constant 0.000000e+00 : f32
      %20 = vector.broadcast %cst_11 : f32 to vector<8x128xf32>
      %c0_12 = arith.constant 0 : index
      %c0_13 = arith.constant 0 : index
      %21 = vector.load %arg3[%c0_12, %c0_13] : memref<8x128xf32, #tpu.memory_space<vmem>>, vector<8x128xf32>
      tpu.vector_store %arg3[%c0_12, %c0_13], %20 {strides = array<i32>} : memref<8x128xf32, #tpu.memory_space<vmem>>, vector<8x128xf32>,
    } else {
    }
    %c0 = arith.constant 0 : index
    %c0_1 = arith.constant 0 : index
    %3 = vector.load %arg1[%c0, %c0_1] : memref<16x128xf32, #tpu.memory_space<vmem>>, vector<16x128xf32>
    %c0_2 = arith.constant 0 : index
    %c0_3 = arith.constant 0 : index
    %4 = vector.load %arg2[%c0_2, %c0_3] : memref<16x128xf32, #tpu.memory_space<vmem>>, vector<16x128xf32>
    %5 = arith.subf %3, %4 : vector<16x128xf32>
    %6 = math.absf %5 : vector<16x128xf32>
    %cst = arith.constant 2.000000e-01 : f32
    %7 = vector.broadcast %cst : f32 to vector<16x128xf32>
    %8 = arith.cmpf ole, %6, %7 : vector<16x128xf32>
    %9 = arith.mulf %6, %6 : vector<16x128xf32>
    %cst_4 = arith.constant 4.000000e-02 : f32
    %10 = vector.broadcast %cst_4 : f32 to vector<16x128xf32>
    %11 = arith.addf %9, %10 : vector<16x128xf32>
    %cst_5 = arith.constant 2.500000e+00 : f32
    %12 = vector.broadcast %cst_5 : f32 to vector<16x128xf32>
    %13 = arith.mulf %11, %12 : vector<16x128xf32>
    %14 = arith.select %8, %6, %13 : vector<16x128xi1>, vector<16x128xf32>
    %c0_6 = arith.constant 0 : index
    %c0_7 = arith.constant 0 : index
    %15 = vector.load %arg3[%c0_6, %c0_7] : memref<8x128xf32, #tpu.memory_space<vmem>>, vector<8x128xf32>
    %16 = vector.shape_cast %14 : vector<16x128xf32> to vector<2x8x128xf32>
    %cst_8 = arith.constant dense<0.000000e+00> : vector<8x128xf32>
    %17 = vector.multi_reduction <add>, %16, %cst_8 [0] : vector<2x8x128xf32> to vector<8x128xf32>
    %18 = arith.addf %15, %17 : vector<8x128xf32>
    %c0_9 = arith.constant 0 : index
    %c0_10 = arith.constant 0 : index
    %19 = vector.load %arg3[%c0_9, %c0_10] : memref<8x128xf32, #tpu.memory_space<vmem>>, vector<8x128xf32>
    tpu.vector_store %arg3[%c0_9, %c0_10], %18 {strides = array<i32>} : memref<8x128xf32, #tpu.memory_space<vmem>>, vector<8x128xf32>,
    return
  }
  func.func @transform_0(%arg0: i32) -> (i32, i32) {
    %c0_i32 = arith.constant 0 : i32
    %c0_i32_0 = arith.constant 0 : i32
    return %arg0, %c0_i32 : i32, i32
  }
  func.func @transform_1(%arg0: i32) -> (i32, i32) {
    %c0_i32 = arith.constant 0 : i32
    %c0_i32_0 = arith.constant 0 : i32
    return %arg0, %c0_i32 : i32, i32
  }
  func.func @transform_2(%arg0: i32) -> (i32, i32) {
    %c0_i32 = arith.constant 0 : i32
    %c0_i32_0 = arith.constant 0 : i32
    %c0_i32_1 = arith.constant 0 : i32
    return %c0_i32, %c0_i32_0 : i32, i32
  }
}

</mosaic_0001>

<bundles_post_ra>
// kernel: tpu_custom_call.1
= control target key start
LH: loop header
LB: loop body
LE: loop exit
PB: predicated region body
PF: predicated region fallthrough
CT: control target
= control target key end

     0   :  { %7 = vsyncpa [#allocation3], 0  ;;  %s217_s0 = inlined_call_operand.hbm [shape: f32[16,128], index: 0, kind: input, shape index: {}]   ;;  %s218_s1 = inlined_call_operand.hbm [shape: f32[16,128], index: 1, kind: input, shape index: {}]   ;;  %s219_s2 = inlined_call_operand.hbm [shape: f32[8,128], index: 2, kind: output, shape index: {}]  }
   0x1   :  { %8 = vsyncpa [#allocation6], 0 }
   0x2   :  { %9 = vsyncpa [#allocation4], 0  ;;  %s161_s9 = smov [#allocation2]   ;;  %s89_s13 = scalar_lea.hbm %s217_s0, 256 }
   0x3   :  { %s15_s10 = sshll.u32 %s161_s9, 4  ;;  %p90_p0 = scmp.ne.s32.totalorder %s217_s0, %s89_s13  ;;  %s16_s10 = int_to_ptr.vmem [resolvable:$true] %s15_s10 }
   0x4   :  { %p93_p1 = scmp.lt.u32.totalorder %s89_s13, %s217_s0 }
   0x6   :  { %p95_p2 = pnand %p93_p1, %p90_p0 }
   0x8   :  { %98 = shalt.err (!%p95_p2)
}
   0x9   :  { %s99_s18 = scalar_lea.vmem %s16_s10, 256  ;;  %p104_p4 = scmp.lt.s32.totalorder %s16_s10, %s16_s10 }
   0xa   :  { %p100_p3 = scmp.ne.s32.totalorder %s16_s10, %s99_s18  ;;  %p105_p5 = scmp.lt.s32.totalorder %s99_s18, %s99_s18 }
   0xc   :  { %p106_p6 = por %p105_p5, %p104_p4 }
   0xe   :  { %p107_p7 = pnand %p106_p6, %p100_p3 }
  0x10   :  { %110 = shalt.err (!%p107_p7)
}
  0x11   :  { %s162_s19 = smov 128   ;;  %s163_s20 = smov 8  }
  0x12   :  { %21 = dma.hbm_to_vmem [thread:$0]  %s217_s0, 256, %s16_s10, [#allocation3], %s162_s19, %s162_s19, %s163_s20  }
  0x13   :  { %s164_s23 = smov [#allocation5]   ;;  %s111_s27 = scalar_lea.hbm %s218_s1, 256 }
  0x14   :  { %s27_s24 = sshll.u32 %s164_s23, 4  ;;  %p112_p8 = scmp.ne.s32.totalorder %s218_s1, %s111_s27  ;;  %s28_s24 = int_to_ptr.vmem [resolvable:$true] %s27_s24 }
  0x15   :  { %p115_p9 = scmp.lt.u32.totalorder %s111_s27, %s218_s1 }
  0x17   :  { %p117_p10 = pnand %p115_p9, %p112_p8 }
  0x19   :  { %120 = shalt.err (!%p117_p10)
}
  0x1a   :  { %s121_s4 = scalar_lea.vmem %s28_s24, 256  ;;  %p126_p12 = scmp.lt.s32.totalorder %s28_s24, %s28_s24 }
  0x1b   :  { %p122_p11 = scmp.ne.s32.totalorder %s28_s24, %s121_s4  ;;  %p127_p13 = scmp.lt.s32.totalorder %s121_s4, %s121_s4 }
  0x1d   :  { %p128_p0 = por %p127_p13, %p126_p12 }
  0x1f   :  { %p129_p1 = pnand %p128_p0, %p122_p11 }
  0x21   :  { %132 = shalt.err (!%p129_p1)
}
  0x22   :  { %33 = dma.hbm_to_vmem [thread:$0]  %s218_s1, 256, %s28_s24, [#allocation6], %s162_s19, %s162_s19, %s163_s20  }
  0x23   :  { %155 = dma.done.wait [#allocation3], 256  }
  0x24   :  { %156 = vsyncadd [#allocation3], 4294967040 }
  0x25   :  { %157 = dma.done.wait [#allocation6], 256  }
  0x26   :  { %158 = vsyncadd [#allocation6], 4294967040  ;;  %v45_v0 = vld [vmem:[#allocation2] sm:$0xff]  ;;  %v46_v1 = vld [vmem:[#allocation2 + $0x8] sm:$0xff]  ;;  %s165_s1 = smov [#allocation7]  }
  0x27   :  { %v47_v2 = vld [vmem:[#allocation5] sm:$0xff]  ;;  %v48_v3 = vld [vmem:[#allocation5 + $0x8] sm:$0xff]  ;;  %s73_s6 = sshll.u32 %s165_s1, 4  ;;  %s74_s6 = int_to_ptr.vmem [resolvable:$true] %s73_s6 }
  0x28   :  { %v49_v4 = vsub.f32 %v45_v0, %v47_v2  ;;  %v50_v5 = vsub.f32 %v46_v1, %v48_v3  ;;  %s133_s7 = scalar_lea.vmem %s74_s6, 128  ;;  %p138_p3 = scmp.lt.s32.totalorder %s74_s6, %s74_s6 }
  0x29   :  { %p134_p2 = scmp.ne.s32.totalorder %s74_s6, %s133_s7  ;;  %p139_p4 = scmp.lt.s32.totalorder %s133_s7, %s133_s7 }
  0x2a   :  { %v51_v6 = vand.u32 2147483647, %v49_v4  ;;  %v52_v7 = vand.u32 2147483647, %v50_v5 }
  0x2b   :  { %p140_p5 = por %p139_p4, %p138_p3 }
  0x2c   :  { %v55_v8 = vmul.f32 %v51_v6, %v51_v6  ;;  %v56_v9 = vmul.f32 %v52_v7, %v52_v7  ;;  %vm53_vm0 = vcmp.le.f32.partialorder %v51_v6, 0.2  ;;  %vm54_vm1 = vcmp.le.f32.partialorder %v52_v7, 0.2 }
  0x2d   :  { %p141_p6 = pnand %p140_p5, %p134_p2 }
  0x2e   :  { %v57_v10 = vadd.f32 0.04, %v55_v8  ;;  %v58_v11 = vadd.f32 0.04, %v56_v9 }
  0x30   :  { %v59_v12 = vmul.f32 2.5, %v57_v10  ;;  %v60_v13 = vmul.f32 2.5, %v58_v11 }
  0x32   :  { %v61_v14 = vsel %vm53_vm0, %v51_v6, %v59_v12  ;;  %v62_v15 = vsel %vm54_vm1, %v52_v7, %v60_v13 }
  0x33   :  { %v64_v16 = vadd.f32 %v62_v15, %v61_v14 }
  0x35   :  { %66 = vst [vmem:[#allocation7] sm:$0xff] %v64_v16 }
  0x36   :  { %144 = shalt.err (!%p141_p6)
}
  0x37   :  { %s145_s10 = scalar_lea.hbm %s219_s2, 128 }
  0x38   :  { %p146_p7 = scmp.ne.s32.totalorder %s219_s2, %s145_s10  ;;  %p149_p8 = scmp.lt.u32.totalorder %s145_s10, %s219_s2 }
  0x3a   :  { %p151_p9 = pnand %p149_p8, %p146_p7 }
  0x3c   :  { %154 = shalt.err (!%p151_p9)
}
  0x3d   :  { %76 = dma.vmem_to_hbm [thread:$0]  %s74_s6, 128, %s219_s2, [#allocation4]  }
  0x3e   :  { %159 = dma.done.wait [#allocation4], 128  }
  0x3f   :  { %160 = vsyncadd [#allocation4], 4294967168 }
  0x40   :  { %80 = vsyncpa [#allocation3], 1 }
  0x41   :  { %81 = vsyncpa [#allocation6], 1 }
  0x42   :  { %82 = vsyncpa [#allocation4], 1 }

</bundles_post_ra>
